<compile_context>
chip_gen: v5e
topology: v5e:2x2
jax: 0.10.0
libtpu: 0.0.40
codegen_flags: <defaults>
</compile_context>

<pallas_src>
import jax
import jax.numpy as jnp
from jax import lax
from jax.experimental import pallas as pl
from jax.experimental.pallas import tpu as pltpu


def _round_up(x, n):
    return (x + n - 1) // n * n


def _cdiv(a, b):
    return (a + b - 1) // b


def _svdd_kernel(idx_ref, f_ref, w2_ref, b1_ref, b2_ref, c_ref, h_ref, dist_ref):
    """Fused multi-hot (gather+Linear1) -> ReLU -> Linear2 (+residual) -> dist.

    Transposed layout: hidden dim on sublanes, batch on lanes.

      idx_ref  : (m, TB)      int32  per-attribute indices, pre-offset into the
                                     concatenated / folded table
      f_ref    : (Hs, A_pad)  f32    Ffold^T (embedding tables folded into W1)
      w2_ref   : (Hs, Hs)     f32    W2^T
      b1_ref   : (Hs, 1)      f32
      b2_ref   : (Hs, 1)      f32
      c_ref    : (Hs, 1)      f32    hypersphere center
      h_ref    : (Hs, TB)     f32    hidden representations (transposed, lane-dense)
      dist_ref : (8, TB)      f32    squared distances (broadcast over 8 sublanes)
    """
    m, tb = idx_ref.shape
    hs, a_pad = f_ref.shape

    idx = idx_ref[...]                                           # (m, TB) int32
    iota = lax.broadcasted_iota(jnp.int32, (a_pad, tb), 0)       # table-row ids on sublanes

    # Exact multi-hot: per-attribute offsets guarantee the m one-hot rows never collide.
    mh = jnp.zeros((a_pad, tb), jnp.float32)
    for j in range(m):                                           # m is small & static
        mh = mh + (iota == idx[j:j + 1, :]).astype(jnp.float32)

    # Gather + Linear1 fused into a single MXU matmul against the folded weights.
    h1 = jnp.maximum(
        jnp.dot(f_ref[...], mh, preferred_element_type=jnp.float32) + b1_ref[...],
        0.0)                                                     # (Hs, TB)
    h2 = jnp.dot(w2_ref[...], h1, preferred_element_type=jnp.float32) + b2_ref[...]
    h = h2 + h1                                                  # residual connection
    h_ref[...] = h

    diff = h - c_ref[...]
    dist = jnp.sum(diff * diff, axis=0, keepdims=True)           # (1, TB) sublane reduce
    dist_ref[...] = jnp.broadcast_to(dist, dist_ref.shape)


def prepare_params(emb_tables, w1, b1, w2, b2, c):
    """One-time parameter preparation (hoisted out of the forward path).

    Folds each embedding table into its slice of W1, transposes everything into the
    hidden-on-sublanes layout used by the kernel, and zero-pads to TPU-friendly
    multiples.  Call once per parameter update, not per forward call.
    """
    m = len(emb_tables)
    D = emb_tables[0].shape[1]
    Hd = w1.shape[1]
    assert w1.shape[0] == m * D and w2.shape == (Hd, Hd)

    arities = [int(t.shape[0]) for t in emb_tables]
    A_total = sum(arities)
    A_pad = _round_up(max(A_total, 8), 8)       # sublane / contraction dim: multiple of 8
    Hs = _round_up(max(Hd, 8), 8)               # hidden dim on sublanes: multiple of 8

    # Ffold[off_j + v, :] = emb_j[v, :] @ W1[j*D:(j+1)*D, :]   (exact algebraic fold)
    folded = [
        jnp.dot(emb_tables[j].astype(jnp.float32),
                w1[j * D:(j + 1) * D, :].astype(jnp.float32))
        for j in range(m)
    ]
    Ffold = jnp.concatenate(folded, axis=0)                                  # (A_total, Hd)
    Ffold_T = jnp.zeros((Hs, A_pad), jnp.float32).at[:Hd, :A_total].set(Ffold.T)
    w2_T = jnp.zeros((Hs, Hs), jnp.float32).at[:Hd, :Hd].set(w2.astype(jnp.float32).T)
    b1c = jnp.zeros((Hs, 1), jnp.float32).at[:Hd, 0].set(b1.astype(jnp.float32))
    b2c = jnp.zeros((Hs, 1), jnp.float32).at[:Hd, 0].set(b2.astype(jnp.float32))
    cc = jnp.zeros((Hs, 1), jnp.float32).at[:Hd, 0].set(c.astype(jnp.float32))

    offs = [0]
    for a in arities[:-1]:
        offs.append(offs[-1] + a)
    offsets = jnp.asarray(offs, dtype=jnp.int32)                             # (m,)

    return dict(Ffold_T=Ffold_T, w2_T=w2_T, b1=b1c, b2=b2c, c=cc,
                offsets=offsets, m=m, hidden_dim=Hd)


def deep_cat_svdd_forward(params, inputs, R, nu, training=False, block_batch=1024):
    """Forward pass of DeepCatSVDD.

    params : dict from prepare_params()
    inputs : (B, m) int32 categorical indices
    Returns (scores_or_loss, H, dist):
      training=False: scores = dist - R**2, shape (B,)
      training=True : scalar SVDD loss  R**2 + mean(max(dist - R**2, 0)) / nu
    """
    B, m = inputs.shape
    assert m == params["m"]
    Hd = params["hidden_dim"]
    Ffold_T = params["Ffold_T"]
    Hs, A_pad = Ffold_T.shape

    # --- offset & transpose the index stream: (m, B) contiguous lane-dense rows ---
    idx_t = (inputs.astype(jnp.int32) + params["offsets"][None, :]).T        # (m, B)

    # --- adaptive batch tiling: tiles are multiples of 128 lanes; keep >= 2 grid
    #     steps when the batch allows it (v7x megacore / pipelining); tail padding is
    #     bounded by < n_tiles*128 rows instead of up to a full max-size tile. ---
    Bp128 = _round_up(B, 128)
    n_tiles = max(1, _cdiv(Bp128, block_batch))
    if Bp128 >= 256:
        n_tiles = max(n_tiles, 2)
    TB = _round_up(_cdiv(Bp128, n_tiles), 128)
    Bp = n_tiles * TB
    if Bp != B:
        # padded columns hit table row 0 -> garbage H/dist; sliced off below.
        idx_t = jnp.pad(idx_t, ((0, 0), (0, Bp - B)))

    flops = 2 * Bp * Hs * (A_pad + Hs) + Bp * (m * A_pad + 4 * Hs)
    bytes_accessed = (Bp * m * 4 + Bp * (Hs + 8) * 4 +
                      (Hs * A_pad + Hs * Hs + 3 * Hs) * 4)

    h_t, dist8 = pl.pallas_call(
        _svdd_kernel,
        out_shape=(jax.ShapeDtypeStruct((Hs, Bp), jnp.float32),
                   jax.ShapeDtypeStruct((8, Bp), jnp.float32)),
        grid=(Bp // TB,),
        in_specs=[
            pl.BlockSpec((m, TB), lambda i: (0, i)),        # indices: streamed per tile
            pl.BlockSpec((Hs, A_pad), lambda i: (0, 0)),    # folded table^T: VMEM resident
            pl.BlockSpec((Hs, Hs), lambda i: (0, 0)),       # W2^T: resident
            pl.BlockSpec((Hs, 1), lambda i: (0, 0)),        # b1
            pl.BlockSpec((Hs, 1), lambda i: (0, 0)),        # b2
            pl.BlockSpec((Hs, 1), lambda i: (0, 0)),        # c
        ],
        out_specs=(pl.BlockSpec((Hs, TB), lambda i: (0, i)),    # H^T: lane-dense
                   pl.BlockSpec((8, TB), lambda i: (0, i))),    # dist: lane-packed
        compiler_params=pltpu.CompilerParams(
            dimension_semantics=("parallel",),
            vmem_limit_bytes=32 * 1024 * 1024),
        cost_estimate=pl.CostEstimate(flops=flops, transcendentals=0,
                                      bytes_accessed=bytes_accessed),
    )(idx_t, Ffold_T, params["w2_T"], params["b1"], params["b2"], params["c"])

    H = h_t[:Hd, :B].T        # (B, hidden_dim)
    dist = dist8[0, :B]       # (B,)

    if training:
        hinge = jnp.maximum(dist - R ** 2, 0.0)
        loss = R ** 2 + hinge.mean() / nu
        return loss, H, dist
    return dist - R ** 2, H, dist


if __name__ == "__main__":
    # --- deterministic synthetic setup (matches module __init__ shapes) ---
    arities = [5, 7, 3, 9]           # n_attributes = m = 4
    m = len(arities)
    embedding_dim = 128
    hidden_dim = 16
    nu = 0.01
    R = 0.0                          # default radius

    key = jax.random.PRNGKey(0)
    k_emb, k_w1, k_b1, k_w2, k_b2, k_in = jax.random.split(key, 6)

    # embedding tables (nn.Embedding(a, embedding_dim) for each attribute)
    emb_tables = [
        jax.random.normal(jax.random.fold_in(k_emb, i),
                          (arities[i], embedding_dim), dtype=jnp.float32) * 0.1
        for i in range(m)
    ]

    # DNN params: Linear(m*D, hidden) -> ReLU -> Linear(hidden, hidden) (+ residual)
    w1 = jax.random.normal(k_w1, (m * embedding_dim, hidden_dim), dtype=jnp.float32) * 0.05
    b1 = jax.random.normal(k_b1, (hidden_dim,), dtype=jnp.float32) * 0.01
    w2 = jax.random.normal(k_w2, (hidden_dim, hidden_dim), dtype=jnp.float32) * 0.1
    b2 = jax.random.normal(k_b2, (hidden_dim,), dtype=jnp.float32) * 0.01
    c = jnp.zeros((hidden_dim,), dtype=jnp.float32)   # hypersphere center

    # one-time parameter preparation (hoisted out of the forward path)
    params = prepare_params(emb_tables, w1, b1, w2, b2, c)
    jax.block_until_ready(params["Ffold_T"])

    def reference(inputs):
        X = jnp.stack([jnp.take(emb_tables[i], inputs[:, i], axis=0) for i in range(m)],
                      axis=1)
        x_flat = X.reshape(inputs.shape[0], m * embedding_dim)
        h1 = jnp.maximum(x_flat @ w1 + b1, 0.0)
        h_ref = h1 @ w2 + b2 + h1
        dist_ref = jnp.sum((h_ref - c[None, :]) ** 2, axis=1)
        return h_ref, dist_ref

    # exercise both the single-tile and the multi-tile (tail-padded) paths
    for B in (8, 300):
        cols = [
            jax.random.randint(jax.random.fold_in(k_in, 100 * B + i), (B,), 0,
                               arities[i], dtype=jnp.int32)
            for i in range(m)
        ]
        inputs = jnp.stack(cols, axis=1)  # (B, m) int32

        # eval-mode forward: anomaly scores dist - R^2
        scores, H, dist = deep_cat_svdd_forward(params, inputs, R, nu, training=False)
        # training-mode forward: scalar SVDD loss
        loss, _, _ = deep_cat_svdd_forward(params, inputs, R, nu, training=True)
        jax.block_until_ready((scores, loss))

        # --- correctness check against a pure-JAX reference ---
        h_ref, dist_ref = reference(inputs)
        hinge_ref = jnp.maximum(dist_ref - R ** 2, 0.0)
        loss_ref = R ** 2 + hinge_ref.mean() / nu

        assert H.shape == (B, hidden_dim)
        assert jnp.allclose(H, h_ref, atol=1e-3, rtol=1e-3)
        assert jnp.allclose(dist, dist_ref, atol=1e-3, rtol=1e-2)
        assert jnp.allclose(scores, dist_ref - R ** 2, atol=1e-3, rtol=1e-2)
        assert jnp.allclose(loss, loss_ref, atol=1e-2, rtol=1e-2)

    print("KERNEL_OK")
</pallas_src>

<mosaic_0001>
module attributes {stable_mosaic.version = 11 : i64} {
  func.func @_svdd_kernel(%arg0: i32, %arg1: memref<4x128xi32, #tpu.memory_space<vmem>>, %arg2: memref<16x24xf32, #tpu.memory_space<vmem>>, %arg3: memref<16x16xf32, #tpu.memory_space<vmem>>, %arg4: memref<16x1xf32, #tpu.memory_space<vmem>>, %arg5: memref<16x1xf32, #tpu.memory_space<vmem>>, %arg6: memref<16x1xf32, #tpu.memory_space<vmem>>, %arg7: memref<16x128xf32, #tpu.memory_space<vmem>>, %arg8: memref<8x128xf32, #tpu.memory_space<vmem>>) attributes {dimension_semantics = [#tpu.dimension_semantics<parallel>], iteration_bounds = array<i64: 1>, scalar_prefetch = 0 : i64, scratch_operands = 0 : i64, tpu.core_type = #tpu.core_type<tc>, window_params = [{transform_indices = @transform_0, window_bounds = array<i64: 4, 128>}, {pipeline_mode = #tpu.pipeline_mode<synchronous>, transform_indices = @transform_1, window_bounds = array<i64: 16, 24>}, {pipeline_mode = #tpu.pipeline_mode<synchronous>, transform_indices = @transform_2, window_bounds = array<i64: 16, 16>}, {pipeline_mode = #tpu.pipeline_mode<synchronous>, transform_indices = @transform_3, window_bounds = array<i64: 16, 1>}, {pipeline_mode = #tpu.pipeline_mode<synchronous>, transform_indices = @transform_4, window_bounds = array<i64: 16, 1>}, {pipeline_mode = #tpu.pipeline_mode<synchronous>, transform_indices = @transform_5, window_bounds = array<i64: 16, 1>}, {transform_indices = @transform_6, window_bounds = array<i64: 16, 128>}, {transform_indices = @transform_7, window_bounds = array<i64: 8, 128>}]} {
    %c0 = arith.constant 0 : index
    %c0_0 = arith.constant 0 : index
    %0 = vector.load %arg1[%c0, %c0_0] : memref<4x128xi32, #tpu.memory_space<vmem>>, vector<4x128xi32>
    %1 = tpu.iota {dimensions = array<i32: 0>} : vector<24x128xi32>
    %cst = arith.constant 0.000000e+00 : f32
    %2 = vector.broadcast %cst : f32 to vector<24x128xf32>
    %3 = vector.extract_strided_slice %0 {offsets = [0, 0], sizes = [1, 128], strides = [1, 1]} : vector<4x128xi32> to vector<1x128xi32>
    %4 = vector.broadcast %3 : vector<1x128xi32> to vector<24x128xi32>
    %5 = arith.cmpi eq, %1, %4 : vector<24x128xi32>
    %6 = arith.extui %5 : vector<24x128xi1> to vector<24x128xi32>
    %7 = arith.sitofp %6 : vector<24x128xi32> to vector<24x128xf32>
    %8 = arith.addf %2, %7 : vector<24x128xf32>
    %9 = vector.extract_strided_slice %0 {offsets = [1, 0], sizes = [1, 128], strides = [1, 1]} : vector<4x128xi32> to vector<1x128xi32>
    %10 = vector.broadcast %9 : vector<1x128xi32> to vector<24x128xi32>
    %11 = arith.cmpi eq, %1, %10 : vector<24x128xi32>
    %12 = arith.extui %11 : vector<24x128xi1> to vector<24x128xi32>
    %13 = arith.sitofp %12 : vector<24x128xi32> to vector<24x128xf32>
    %14 = arith.addf %8, %13 : vector<24x128xf32>
    %15 = vector.extract_strided_slice %0 {offsets = [2, 0], sizes = [1, 128], strides = [1, 1]} : vector<4x128xi32> to vector<1x128xi32>
    %16 = vector.broadcast %15 : vector<1x128xi32> to vector<24x128xi32>
    %17 = arith.cmpi eq, %1, %16 : vector<24x128xi32>
    %18 = arith.extui %17 : vector<24x128xi1> to vector<24x128xi32>
    %19 = arith.sitofp %18 : vector<24x128xi32> to vector<24x128xf32>
    %20 = arith.addf %14, %19 : vector<24x128xf32>
    %21 = vector.extract_strided_slice %0 {offsets = [3, 0], sizes = [1, 128], strides = [1, 1]} : vector<4x128xi32> to vector<1x128xi32>
    %22 = vector.broadcast %21 : vector<1x128xi32> to vector<24x128xi32>
    %23 = arith.cmpi eq, %1, %22 : vector<24x128xi32>
    %24 = arith.extui %23 : vector<24x128xi1> to vector<24x128xi32>
    %25 = arith.sitofp %24 : vector<24x128xi32> to vector<24x128xf32>
    %26 = arith.addf %20, %25 : vector<24x128xf32>
    %c0_1 = arith.constant 0 : index
    %c0_2 = arith.constant 0 : index
    %27 = vector.load %arg2[%c0_1, %c0_2] : memref<16x24xf32, #tpu.memory_space<vmem>>, vector<16x24xf32>
    %cst_3 = arith.constant dense<0.000000e+00> : vector<16x128xf32>
    %28 = tpu.matmul %27, %26, %cst_3 {dimension_numbers = #tpu.dot_dimension_numbers<[1], [0], [0], [1], [0, 0, 1, 1], [], []>} : vector<16x24xf32>, vector<24x128xf32>, vector<16x128xf32> -> vector<16x128xf32>
    %c0_4 = arith.constant 0 : index
    %c0_5 = arith.constant 0 : index
    %29 = vector.load %arg4[%c0_4, %c0_5] : memref<16x1xf32, #tpu.memory_space<vmem>>, vector<16x1xf32>
    %30 = vector.broadcast %29 : vector<16x1xf32> to vector<16x128xf32>
    %31 = arith.addf %28, %30 : vector<16x128xf32>
    %cst_6 = arith.constant 0.000000e+00 : f32
    %32 = vector.broadcast %cst_6 : f32 to vector<16x128xf32>
    %33 = arith.maximumf %31, %32 : vector<16x128xf32>
    %c0_7 = arith.constant 0 : index
    %c0_8 = arith.constant 0 : index
    %34 = vector.load %arg3[%c0_7, %c0_8] : memref<16x16xf32, #tpu.memory_space<vmem>>, vector<16x16xf32>
    %cst_9 = arith.constant dense<0.000000e+00> : vector<16x128xf32>
    %35 = tpu.matmul %34, %33, %cst_9 {dimension_numbers = #tpu.dot_dimension_numbers<[1], [0], [0], [1], [0, 0, 1, 1], [], []>} : vector<16x16xf32>, vector<16x128xf32>, vector<16x128xf32> -> vector<16x128xf32>
    %c0_10 = arith.constant 0 : index
    %c0_11 = arith.constant 0 : index
    %36 = vector.load %arg5[%c0_10, %c0_11] : memref<16x1xf32, #tpu.memory_space<vmem>>, vector<16x1xf32>
    %37 = vector.broadcast %36 : vector<16x1xf32> to vector<16x128xf32>
    %38 = arith.addf %35, %37 : vector<16x128xf32>
    %39 = arith.addf %38, %33 : vector<16x128xf32>
    %c0_12 = arith.constant 0 : index
    %c0_13 = arith.constant 0 : index
    %40 = vector.load %arg7[%c0_12, %c0_13] : memref<16x128xf32, #tpu.memory_space<vmem>>, vector<16x128xf32>
    tpu.vector_store %arg7[%c0_12, %c0_13], %39 {strides = array<i32>} : memref<16x128xf32, #tpu.memory_space<vmem>>, vector<16x128xf32>,
    %c0_14 = arith.constant 0 : index
    %c0_15 = arith.constant 0 : index
    %41 = vector.load %arg6[%c0_14, %c0_15] : memref<16x1xf32, #tpu.memory_space<vmem>>, vector<16x1xf32>
    %42 = vector.broadcast %41 : vector<16x1xf32> to vector<16x128xf32>
    %43 = arith.subf %39, %42 : vector<16x128xf32>
    %44 = arith.mulf %43, %43 : vector<16x128xf32>
    %cst_16 = arith.constant dense<0.000000e+00> : vector<128xf32>
    %45 = vector.multi_reduction <add>, %44, %cst_16 [0] : vector<16x128xf32> to vector<128xf32>
    %46 = vector.shape_cast %45 : vector<128xf32> to vector<1x128xf32>
    %47 = vector.shape_cast %46 : vector<1x128xf32> to vector<1x128xf32>
    %48 = vector.broadcast %47 : vector<1x128xf32> to vector<8x128xf32>
    %c0_17 = arith.constant 0 : index
    %c0_18 = arith.constant 0 : index
    %49 = vector.load %arg8[%c0_17, %c0_18] : memref<8x128xf32, #tpu.memory_space<vmem>>, vector<8x128xf32>
    tpu.vector_store %arg8[%c0_17, %c0_18], %48 {strides = array<i32>} : memref<8x128xf32, #tpu.memory_space<vmem>>, vector<8x128xf32>,
    return
  }
  func.func @transform_0(%arg0: i32) -> (i32, i32) {
    %c0_i32 = arith.constant 0 : i32
    %c0_i32_0 = arith.constant 0 : i32
    return %c0_i32, %arg0 : i32, i32
  }
  func.func @transform_1(%arg0: i32) -> (i32, i32) {
    %c0_i32 = arith.constant 0 : i32
    %c0_i32_0 = arith.constant 0 : i32
    %c0_i32_1 = arith.constant 0 : i32
    return %c0_i32, %c0_i32_0 : i32, i32
  }
  func.func @transform_2(%arg0: i32) -> (i32, i32) {
    %c0_i32 = arith.constant 0 : i32
    %c0_i32_0 = arith.constant 0 : i32
    %c0_i32_1 = arith.constant 0 : i32
    return %c0_i32, %c0_i32_0 : i32, i32
  }
  func.func @transform_3(%arg0: i32) -> (i32, i32) {
    %c0_i32 = arith.constant 0 : i32
    %c0_i32_0 = arith.constant 0 : i32
    %c0_i32_1 = arith.constant 0 : i32
    return %c0_i32, %c0_i32_0 : i32, i32
  }
  func.func @transform_4(%arg0: i32) -> (i32, i32) {
    %c0_i32 = arith.constant 0 : i32
    %c0_i32_0 = arith.constant 0 : i32
    %c0_i32_1 = arith.constant 0 : i32
    return %c0_i32, %c0_i32_0 : i32, i32
  }
  func.func @transform_5(%arg0: i32) -> (i32, i32) {
    %c0_i32 = arith.constant 0 : i32
    %c0_i32_0 = arith.constant 0 : i32
    %c0_i32_1 = arith.constant 0 : i32
    return %c0_i32, %c0_i32_0 : i32, i32
  }
  func.func @transform_6(%arg0: i32) -> (i32, i32) {
    %c0_i32 = arith.constant 0 : i32
    %c0_i32_0 = arith.constant 0 : i32
    return %c0_i32, %arg0 : i32, i32
  }
  func.func @transform_7(%arg0: i32) -> (i32, i32) {
    %c0_i32 = arith.constant 0 : i32
    %c0_i32_0 = arith.constant 0 : i32
    return %c0_i32, %arg0 : i32, i32
  }
}

</mosaic_0001>

<bundles_post_ra>
// kernel: tpu_custom_call.1
= control target key start
LH: loop header
LB: loop body
LE: loop exit
PB: predicated region body
PF: predicated region fallthrough
CT: control target
= control target key end

     0   :  { %13 = vsyncpa [#allocation3], 0  ;;  %v28_v1 = vlaneseq  ;;  %s405_s0 = inlined_call_operand.vmem [shape: s32[4,128], index: 0, kind: input, shape index: {}]   ;;  %s406_s1 = inlined_call_operand.vmem [shape: f32[16,24], index: 1, kind: input, shape index: {}]   ;;  %s407_s2 = inlined_call_operand.vmem [shape: f32[16,16], index: 2, kind: input, shape index: {}]   ;;  %s408_s3 = inlined_call_operand.vmem [shape: f32[16,1], index: 3, kind: input, shape index: {}]   ;;  %s409_s4 = inlined_call_operand.vmem [shape: f32[16,1], index: 4, kind: input, shape index: {}]   ;;  %s410_s5 = inlined_call_operand.vmem [shape: f32[16,1], index: 5, kind: input, shape index: {}]   ;;  %s411_s6 = inlined_call_operand.hbm [shape: f32[16,128], index: 6, kind: output, shape index: {0}]   ;;  %s412_s7 = inlined_call_operand.hbm [shape: f32[8,128], index: 7, kind: output, shape index: {1}]  }
   0x1   :  { %v27_v0 = vld [vmem:[%s405_s0] sm:$0xf]  ;;  %v87_v4 = vld [vmem:[%s408_s3 + $0x8] sm:$0xff] }
   0x2   :  { %v32_v2 = vperm.slane %v27_v0, 0  ;;  %v45_v3 = vperm.slane %v27_v0, 1  ;;  %v29_v5 = vshrl.u32 %v28_v1, 7  ;;  %v58_v6 = vperm.slane %v27_v0, 2 }
   0x3   :  { %v71_v7 = vperm.slane %v27_v0, 3 }
   0x4   :  { %14 = vsyncpa [#allocation5], 0  ;;  %v318_v8 = vmov 0   ;;  %v31_v9 = vadd.s32 16, %v29_v5  ;;  %v30_v10 = vadd.s32 8, %v29_v5  ;;  %vm33_vm0 = vcmp.eq.s32.totalorder %v29_v5, %v32_v2  ;;  %v86_v22 = vld [vmem:[%s408_s3] sm:$0xff] }
   0x5   :  { %263 = vset.pattern.permute.xlu0 %v318_v8  ;;  %264 = vset.pattern.permute.xlu1 %v318_v8  ;;  %vm46_vm1 = vcmp.eq.s32.totalorder %v29_v5, %v45_v3  ;;  %v319_v11 = vmov 0.0   ;;  %vm59_vm2 = vcmp.eq.s32.totalorder %v29_v5, %v58_v6  ;;  %vm72_vm3 = vcmp.eq.s32.totalorder %v29_v5, %v71_v7  ;;  %v84_v34 = vld [vmem:[%s406_s1] sm:$0xff]  ;;  %v85_v35 = vld [vmem:[%s406_s1 + $0x8] sm:$0xff]  ;;  %s208_s22 = sshll.u32 %s411_s6, 4  ;;  %s322_s23 = smov 8   ;;  %s209_s22 = int_to_ptr.hbm [resolvable:$true] %s208_s22 }
   0x6   :  { %95 = vperm.xlu0 %263, %v87_v4   ;;  %265 = vset.pattern.permute.xlu2 %v318_v8  ;;  %v236_v12 = vsel %vm33_vm0, 1.0, %v319_v11  ;;  %v239_v13 = vsel %vm46_vm1, 1.0, %v319_v11  ;;  %vm35_vm4 = vcmp.eq.s32.totalorder %v31_v9, %v32_v2  ;;  %vm48_vm5 = vcmp.eq.s32.totalorder %v31_v9, %v45_v3  ;;  %v132_v36 = vld [vmem:[%s409_s4] sm:$0xff]  ;;  %v133_v38 = vld [vmem:[%s409_s4 + $0x8] sm:$0xff]  ;;  %s323_s6 = smov [#allocation4]   ;;  %s222_s27 = sshll.u32 %s412_s7, 4  ;;  %s223_s27 = int_to_ptr.hbm [resolvable:$true] %s222_s27 }
   0x7   :  { %vm61_vm6 = vcmp.eq.s32.totalorder %v31_v9, %v58_v6  ;;  %vm74_vm7 = vcmp.eq.s32.totalorder %v31_v9, %v71_v7  ;;  %v238_v14 = vsel %vm35_vm4, 1.0, %v319_v11  ;;  %v241_v15 = vsel %vm48_vm5, 1.0, %v319_v11  ;;  %v178_v37 = vld [vmem:[%s410_s5] sm:$0xff]  ;;  %136 = vperm.xlu1 %264, %v132_v36   ;;  %v179_v39 = vld [vmem:[%s410_s5 + $0x8] sm:$0xff]  ;;  %s320_s5 = smov [#allocation2]   ;;  %s220_s24 = sshll.u32 %s323_s6, 4  ;;  %s221_s24 = int_to_ptr.vmem [resolvable:$true] %s220_s24 }
   0x8   :  { %v244_v16 = vsel %vm61_vm6, 1.0, %v319_v11  ;;  %v247_v17 = vsel %vm74_vm7, 1.0, %v319_v11  ;;  %v57_v18 = vadd.f32 %v241_v15, %v238_v14  ;;  %vm34_vm8 = vcmp.eq.s32.totalorder %v30_v10, %v32_v2  ;;  %182 = vperm.xlu2 %265, %v178_v37   ;;  %v130_v48 = vld [vmem:[%s407_s2] sm:$0xff]  ;;  %v131_v49 = vld [vmem:[%s407_s2 + $0x8] sm:$0xff]  ;;  %s206_s19 = sshll.u32 %s320_s5, 4  ;;  %s321_s2 = smov 128   ;;  %s207_s19 = int_to_ptr.vmem [resolvable:$true] %s206_s19 }
   0x9   :  { %vm47_vm9 = vcmp.eq.s32.totalorder %v30_v10, %v45_v3  ;;  %vm60_vm10 = vcmp.eq.s32.totalorder %v30_v10, %v58_v6  ;;  %v237_v19 = vsel %vm34_vm8, 1.0, %v319_v11  ;;  %vm73_vm11 = vcmp.eq.s32.totalorder %v30_v10, %v71_v7 }
   0xa   :  { %v240_v20 = vsel %vm47_vm9, 1.0, %v319_v11  ;;  %v243_v21 = vsel %vm60_vm10, 1.0, %v319_v11  ;;  %v70_v23 = vadd.f32 %v244_v16, %v57_v18  ;;  %v55_v25 = vadd.f32 %v239_v13, %v236_v12 }
   0xb   :  { %v56_v24 = vadd.f32 %v240_v20, %v237_v19  ;;  %v246_v26 = vsel %vm73_vm11, 1.0, %v319_v11  ;;  %v242_v27 = vsel %vm59_vm2, 1.0, %v319_v11  ;;  %v245_v28 = vsel %vm72_vm3, 1.0, %v319_v11 }
   0xc   :  { %v83_v29 = vadd.f32 %v247_v17, %v70_v23  ;;  %v68_v31 = vadd.f32 %v242_v27, %v55_v25  ;;  %vm98_vm12 = vcmask 195584   ;;  %vm144_vm13 = vcmask 130048  }
   0xd   :  { %v69_v30 = vadd.f32 %v243_v21, %v56_v24 }
   0xe   :  { %90 = vperm.xlu0 %263, %v86_v22   ;;  %118 = vmatpush.msra.mxu0 %v83_v29  ;;  %v81_v33 = vadd.f32 %v245_v28, %v68_v31 }
   0xf   :  { %252 = vmatpush.msra.mxu2 %v83_v29  ;;  %v82_v32 = vadd.f32 %v246_v26, %v69_v30  ;;  %141 = vperm.xlu1 %264, %v133_v38  }
  0x10   :  { %187 = vperm.xlu2 %265, %v179_v39  }
  0x11   :  { %119 = vmatpush.msra.mxu0 %v82_v32  ;;  %253 = vmatpush.msra.mxu2 %v82_v32 }
  0x13   :  { %120 = vmatpush.msra.mxu0 %v81_v33  ;;  %254 = vmatpush.msra.mxu2 %v81_v33 }
  0x14   :  { %248 = vmatmul.msk.f32.vlgmr.msra.gmra.mxu0 %vm98_vm12, %v84_v34  ;;  %249 = vmatmul.msk.f32.vlgmr.msra.gmra.mxu2 %vm98_vm12, %v85_v35 }
  0x62   :  { %v183_v51 = vpop.permute.xlu2 %182 }
  0x6a   :  { %v188_v60 = vpop.permute.xlu2 %187 }
  0x78   :  { %v96_v40 = vpop.permute.xlu0 %95 }
  0x79   :  { %v137_v50 = vpop.permute.xlu1 %136 }
  0x80   :  { %v91_v41 = vpop.permute.xlu0 %90 }
  0x81   :  { %v142_v55 = vpop.permute.xlu1 %141 }
  0x91   :  { %v122_v42 = vpop.f32.mrf.mxu0 }
  0x92   :  { %v123_v44 = vadd.f32 %v122_v42, %v91_v41 }
  0x94   :  { %v128_v47 = vmax.f32 %v123_v44, 0.0 }
  0x97   :  { %v125_v43 = vpop.f32.mrf.mxu2 }
  0x98   :  { %v126_v45 = vadd.f32 %v125_v43, %v96_v40 }
  0x9a   :  { %v129_v46 = vmax.f32 %v126_v45, 0.0 }
  0x9c   :  { %165 = vmatpush.msra.mxu1 %v129_v46  ;;  %255 = vmatpush.msra.mxu3 %v129_v46 }
  0x9e   :  { %166 = vmatpush.msra.mxu1 %v128_v47  ;;  %256 = vmatpush.msra.mxu3 %v128_v47 }
  0x9f   :  { %250 = vmatmul.msk.f32.vlgmr.msra.gmra.mxu1 %vm144_vm13, %v130_v48  ;;  %251 = vmatmul.msk.f32.vlgmr.msra.gmra.mxu3 %vm144_vm13, %v131_v49 }
 0x11c   :  { %v168_v52 = vpop.f32.mrf.mxu1 }
 0x11d   :  { %v169_v53 = vadd.f32 %v168_v52, %v137_v50 }
 0x11f   :  { %v174_v54 = vadd.f32 %v169_v53, %v128_v47 }
 0x121   :  { %176 = vst [vmem:[#allocation2] sm:$0xff] %v174_v54  ;;  %v190_v58 = vsub.f32 %v174_v54, %v183_v51 }
 0x122   :  { %v171_v56 = vpop.f32.mrf.mxu3 }
 0x123   :  { %v172_v57 = vadd.f32 %v171_v56, %v142_v55  ;;  %v192_v62 = vmul.f32 %v190_v58, %v190_v58 }
 0x125   :  { %v175_v59 = vadd.f32 %v172_v57, %v129_v46 }
 0x127   :  { %177 = vst [vmem:[#allocation2 + $0x8] sm:$0xff] %v175_v59  ;;  %v191_v61 = vsub.f32 %v175_v59, %v188_v60 }
 0x128   :  { %214 = dma.vmem_to_hbm [thread:$0]  %s207_s19, 256, %s209_s22, [#allocation3], %s321_s2, %s321_s2, %s322_s23  }
 0x129   :  { %v193_v63 = vmul.f32 %v191_v61, %v191_v61 }
 0x12b   :  { %v194_v0 = vadd.f32 %v193_v63, %v192_v62 }
 0x12d   :  { %v195_v1 = vrot.slane %v194_v0, 4 }
 0x12f   :  { %v196_v2 = vadd.f32 %v195_v1, %v194_v0 }
 0x131   :  { %v197_v3 = vrot.slane %v196_v2, 2 }
 0x133   :  { %v198_v4 = vadd.f32 %v197_v3, %v196_v2 }
 0x135   :  { %v199_v5 = vrot.slane %v198_v4, 1 }
 0x137   :  { %v200_v6 = vadd.f32 %v199_v5, %v198_v4 }
 0x139   :  { %201 = vst [vmem:[#allocation4] sm:$0xff] %v200_v6 }
 0x13a   :  { %225 = dma.vmem_to_hbm [thread:$0]  %s221_s24, 128, %s223_s27, [#allocation5]  }
 0x13b   :  { %314 = dma.done.wait [#allocation3], 256  }
 0x13c   :  { %315 = vsyncadd [#allocation3], 4294967040 }
 0x13d   :  { %316 = dma.done.wait [#allocation5], 128  }
 0x13e   :  { %317 = vsyncadd [#allocation5], 4294967168 }
 0x13f   :  { %234 = vsyncpa [#allocation3], 1 }
 0x140   :  { %235 = vsyncpa [#allocation5], 1 }

</bundles_post_ra>
